<compile_context>
chip_gen: v7x
topology: tpu7x:2x2x1
jax: 0.10.0
libtpu: 0.0.40
codegen_flags: <defaults>
</compile_context>

<pallas_src>
import functools

import jax
import jax.numpy as jnp
import numpy as np
from jax.experimental import pallas as pl
from jax.experimental.pallas import tpu as pltpu

EPS = 1e-5          # InstanceNorm2d default eps
NEG_SLOPE = 0.2     # LeakyReLU slope


# ----------------------------------------------------------------------------
# Fused res_convdown kernel (one grid step per batch element)
# ----------------------------------------------------------------------------
def _res_convdown_kernel(p_ref, tm_ref, vm_ref,
                         wd_ref, bd_ref, w1s_ref, b1s_ref,
                         w2_ref, b2_ref,
                         o_ref, *, Wo, Pd):
    """Refs:
      p_ref  : [1, 9*Cin, Ppad]  im2col patches of the stride-2 down conv
      tm_ref : [9, 1, Ppad]      per-tap validity masks (stride-1 3x3 taps)
      vm_ref : [1, Ppad] f32     valid-column mask (flattened spatial < Pd)
      wd_ref : [Cin, 9*Cin]      down-conv weights (tap-major K)
      w1s_ref: [2*Cout, 9*Cin]   conv1 weights ++ 1x1 skip weights (centre tap)
      w2_ref : [9, Cout, Cout]   conv2 weights, per tap
      b*_ref : [C, 1] f32        biases (b1s = [b1; bs])
      o_ref  : [1, Cout, Ppad]   output (LeakyReLU(skip + branch))
    """
    cdtype = p_ref.dtype
    Ppad = p_ref.shape[-1]
    Cout = o_ref.shape[1]
    vmask = vm_ref[...]                       # [1, Ppad] f32
    inv_n = 1.0 / Pd

    def lane_shift(x, s):
        # y[:, p] = x[:, (p + s) % Ppad]  (single XLU lane rotate, nearly free).
        # Wrapped / padded-tail source lanes are zeroed by the per-tap masks.
        if s == 0:
            return x
        return pltpu.roll(x, shift=(-s) % Ppad, axis=1)

    def tap(x, t):
        dy, dx = t // 3 - 1, t % 3 - 1
        return lane_shift(x, dy * Wo + dx) * tm_ref[t]

    def inorm(a):
        # Single-pass InstanceNorm over the Pd valid lanes: biased variance,
        # eps=1e-5, no affine.  var = E[x^2] - mean^2, rsqrt on EUP.
        av = a * vmask
        mean = jnp.sum(av, axis=1, keepdims=True) * inv_n
        var = jnp.sum(av * av, axis=1, keepdims=True) * inv_n - mean * mean
        var = jnp.maximum(var, 0.0)
        return (a - mean) * jax.lax.rsqrt(var + EPS)

    def lrelu(a):
        return jnp.where(a >= 0, a, NEG_SLOPE * a)

    # --- stride-2 down conv (3x3, pad 1): patches pre-gathered in the wrapper.
    d = jnp.dot(wd_ref[...], p_ref[0],
                preferred_element_type=jnp.float32) + bd_ref[...]   # [Cin, Ppad]
    d_c = d.astype(cdtype)

    # --- conv1 (3x3) and the 1x1 skip conv fused into ONE MXU matmul.
    #     Centre tap of im2col(d) is d itself, so rows [Cout:] of w1s (the skip
    #     weights placed in the centre-tap columns) reproduce ws @ d exactly on
    #     the valid lanes.
    cols1 = jnp.concatenate([tap(d_c, t) for t in range(9)], axis=0)  # [9*Cin, Ppad]
    hs = jnp.dot(w1s_ref[...], cols1,
                 preferred_element_type=jnp.float32) + b1s_ref[...]  # [2*Cout, Ppad]
    skip = hs[Cout:]
    h = lrelu(inorm(hs[:Cout]))

    # --- conv2 (3x3) as per-tap accumulated matmuls: no [9*Cout, Ppad] im2col
    #     temporary in VMEM; FLOPs unchanged (MXU does multiple K passes anyway
    #     once 9*Cout > the systolic K).
    h_c = h.astype(cdtype)
    acc = None
    for t in range(9):
        term = jnp.dot(w2_ref[t], tap(h_c, t),
                       preferred_element_type=jnp.float32)
        acc = term if acc is None else acc + term
    h2 = inorm(acc + b2_ref[...])

    # --- residual add + LeakyReLU(0.2); f32 math, cast once on the store.
    o_ref[0] = lrelu(skip + h2).astype(o_ref.dtype)


# ----------------------------------------------------------------------------
# Wrapper: layout/weight plumbing + pallas_call
# ----------------------------------------------------------------------------
def res_convdown_forward(params, x_nchw, compute_dtype=jnp.bfloat16,
                         out_dtype=None):
    if out_dtype is None:
        out_dtype = compute_dtype
    N, Cin, H, W = x_nchw.shape
    Cout = params["w1"].shape[0]
    Ho = (H + 2 - 3) // 2 + 1
    Wo = (W + 2 - 3) // 2 + 1
    Pd = Ho * Wo
    Ppad = max(128, ((Pd + 127) // 128) * 128)     # lane-dense flattened spatial
    Kd = 9 * Cin

    # im2col for the STRIDE-2 down conv only (output spatial is P/4 so this is
    # ~2.25x the raw input bytes, not 9x); done directly in the compute dtype
    # to halve its XLA-side HBM traffic.  The stride-1 convs are built
    # in-kernel from lane rotates.
    x = x_nchw.astype(compute_dtype)
    xp = jnp.pad(x, ((0, 0), (0, 0), (1, 1), (1, 1)))
    cols = []
    for ky in range(3):
        for kx in range(3):
            sl = xp[:, :, ky:ky + 2 * Ho - 1:2, kx:kx + 2 * Wo - 1:2]
            cols.append(sl.reshape(N, Cin, Pd))
    patches = jnp.concatenate(cols, axis=1)                      # [N, 9*Cin, Pd]
    patches = jnp.pad(patches, ((0, 0), (0, 0), (0, Ppad - Pd)))

    # Per-tap validity masks (host-side constants, no int div/mod in-kernel):
    # output lane must be a real pixel, the tap source must be spatially in
    # bounds, and the flat source index must land in [0, Pd) — this also masks
    # pltpu.roll wrap-around and reads from the padded lane tail of d/h (which
    # holds bias values, not zeros).
    pidx = np.arange(Ppad, dtype=np.int64)
    r, c = pidx // Wo, pidx % Wo
    tap_masks = []
    for ky in range(3):
        for kx in range(3):
            dy, dx = ky - 1, kx - 1
            src = pidx + dy * Wo + dx
            m = ((r < Ho) & (r + dy >= 0) & (r + dy < Ho)
                 & (c + dx >= 0) & (c + dx < Wo)
                 & (src >= 0) & (src < Pd))
            tap_masks.append(m)
    tap_mask = jnp.asarray(np.stack(tap_masks).reshape(9, 1, Ppad)
                           .astype(np.float32), dtype=compute_dtype)
    vmask = jnp.asarray((r < Ho).reshape(1, Ppad).astype(np.float32))

    # Weight plumbing: K index = (ky*3 + kx)*C_in + c_in for every 3x3 weight.
    def w3x3(w):
        co = w.shape[0]
        return jnp.transpose(w, (0, 2, 3, 1)).reshape(co, -1)

    wd_t = w3x3(params["wd"]).astype(compute_dtype)              # [Cin,  9*Cin]
    w1_t = w3x3(params["w1"]).astype(jnp.float32)                # [Cout, 9*Cin]
    ws2d = params["ws"].reshape(Cout, Cin).astype(jnp.float32)   # [Cout, Cin]
    w1s = jnp.zeros((2 * Cout, Kd), jnp.float32)
    w1s = w1s.at[:Cout].set(w1_t)
    w1s = w1s.at[Cout:, 4 * Cin:5 * Cin].set(ws2d)               # skip @ centre tap
    w1s = w1s.astype(compute_dtype)
    w2_taps = (jnp.transpose(params["w2"], (2, 3, 0, 1))
               .reshape(9, Cout, Cout).astype(compute_dtype))

    bd = params["bd"].reshape(Cin, 1).astype(jnp.float32)
    b1s = (jnp.concatenate([params["b1"], params["bs"]])
           .reshape(2 * Cout, 1).astype(jnp.float32))
    b2 = params["b2"].reshape(Cout, 1).astype(jnp.float32)

    itm = jnp.dtype(compute_dtype).itemsize
    otm = jnp.dtype(out_dtype).itemsize
    mac = Cin * Kd + 2 * Cout * Kd + 9 * Cout * Cout
    cost = pl.CostEstimate(
        flops=int(2 * N * Ppad * mac),
        transcendentals=int(2 * N * Cout),
        bytes_accessed=int(N * Kd * Ppad * itm + 10 * Ppad * 4
                           + mac * itm + (Cin + 3 * Cout) * 4
                           + N * Cout * Ppad * otm),
    )

    # Scoped VMEM sized from the actual footprint (default 16/32 MiB limits are
    # easily exceeded by the double-buffered patches block at real sizes).
    vmem_bytes = (
        2 * Kd * Ppad * itm                 # patches (double-buffered)
        + 2 * Cout * Ppad * otm             # output  (double-buffered)
        + 10 * Ppad * 4                     # tap + valid masks
        + (Cin * Kd + 2 * Cout * Kd + 9 * Cout * Cout) * itm
        + (Cin + 3 * Cout) * 4
        + Kd * Ppad * itm                   # in-kernel im2col of d
        + Cin * Ppad * (4 + itm)            # d / d_c
        + 6 * Cout * Ppad * 4               # hs / h / acc / h2 f32 temporaries
    )
    vmem_limit = int(min(100 * 1024 * 1024,
                         max(32 * 1024 * 1024, 2 * vmem_bytes)))

    kernel = functools.partial(_res_convdown_kernel, Wo=Wo, Pd=Pd)
    out = pl.pallas_call(
        kernel,
        out_shape=jax.ShapeDtypeStruct((N, Cout, Ppad), out_dtype),
        grid=(N,),
        in_specs=[
            pl.BlockSpec((1, Kd, Ppad), lambda n: (n, 0, 0)),     # patches
            pl.BlockSpec((9, 1, Ppad), lambda n: (0, 0, 0)),      # tap masks
            pl.BlockSpec((1, Ppad), lambda n: (0, 0)),            # valid-col mask
            pl.BlockSpec((Cin, Kd), lambda n: (0, 0)),            # wd_t
            pl.BlockSpec((Cin, 1), lambda n: (0, 0)),             # bd
            pl.BlockSpec((2 * Cout, Kd), lambda n: (0, 0)),       # w1s (conv1+skip)
            pl.BlockSpec((2 * Cout, 1), lambda n: (0, 0)),        # b1s
            pl.BlockSpec((9, Cout, Cout), lambda n: (0, 0, 0)),   # w2 per tap
            pl.BlockSpec((Cout, 1), lambda n: (0, 0)),            # b2
        ],
        out_specs=pl.BlockSpec((1, Cout, Ppad), lambda n: (n, 0, 0)),
        compiler_params=pltpu.CompilerParams(
            dimension_semantics=("parallel",),
            vmem_limit_bytes=vmem_limit),
        cost_estimate=cost,
    )(patches, tap_mask, vmask, wd_t, bd, w1s, b1s, w2_taps, b2)

    return out[:, :, :Pd].reshape(N, Cout, Ho, Wo)


# ----------------------------------------------------------------------------
# Pure-JAX reference (lax.conv, float32) for correctness checks
# ----------------------------------------------------------------------------
def _ref_conv(x, w, b, stride, pad):
    y = jax.lax.conv_general_dilated(
        x, w, (stride, stride), [(pad, pad), (pad, pad)],
        dimension_numbers=("NCHW", "OIHW", "NCHW"),
        precision=jax.lax.Precision.HIGHEST)
    return y + b.reshape(1, -1, 1, 1)


def _ref_in(x):
    mean = x.mean(axis=(2, 3), keepdims=True)
    var = ((x - mean) ** 2).mean(axis=(2, 3), keepdims=True)
    return (x - mean) * jax.lax.rsqrt(var + EPS)


def _ref_lrelu(x):
    return jnp.where(x >= 0, x, NEG_SLOPE * x)


def res_convdown_reference(params, x_nchw):
    x = x_nchw.astype(jnp.float32)
    d = _ref_conv(x, params["wd"], params["bd"], 2, 1)
    h = _ref_lrelu(_ref_in(_ref_conv(d, params["w1"], params["b1"], 1, 1)))
    h = _ref_in(_ref_conv(h, params["w2"], params["b2"], 1, 1))
    skip = _ref_conv(d, params["ws"], params["bs"], 1, 0)
    return _ref_lrelu(skip + h)


# ----------------------------------------------------------------------------
# Deterministic parameter init
# ----------------------------------------------------------------------------
def init_params(key, in_ch, out_ch):
    ks = jax.random.split(key, 4)

    def conv(k, co, ci, ksz):
        kw, kb = jax.random.split(k)
        return (jax.random.normal(kw, (co, ci, ksz, ksz), jnp.float32) * 0.05,
                jax.random.normal(kb, (co,), jnp.float32) * 0.05)

    wd, bd = conv(ks[0], in_ch, in_ch, 3)    # self.down  (stride-2 3x3)
    w1, b1 = conv(ks[1], out_ch, in_ch, 3)   # conv branch, first 3x3
    w2, b2 = conv(ks[2], out_ch, out_ch, 3)  # conv branch, second 3x3
    ws, bs = conv(ks[3], out_ch, in_ch, 1)   # self.conv_input (1x1 skip)
    return dict(wd=wd, bd=bd, w1=w1, b1=b1, w2=w2, b2=b2, ws=ws, bs=bs)


if __name__ == "__main__":
    key = jax.random.PRNGKey(0)
    k_param, k_x = jax.random.split(key)

    in_ch, out_ch = 8, 16
    params = init_params(k_param, in_ch, out_ch)
    x = jax.random.normal(k_x, (2, in_ch, 16, 16), jnp.float32)

    ref = jax.block_until_ready(res_convdown_reference(params, x))

    # float32 compute path: strict check of the fused kernel's logic.
    out_f32 = jax.block_until_ready(
        res_convdown_forward(params, x, compute_dtype=jnp.float32,
                             out_dtype=jnp.float32))
    assert out_f32.shape == (2, out_ch, 8, 8), out_f32.shape
    np.testing.assert_allclose(np.asarray(out_f32), np.asarray(ref),
                               atol=2e-2, rtol=2e-2)

    # bf16 compute path (default; halves HBM/VMEM traffic, MXU-native inputs).
    out_bf16 = jax.block_until_ready(
        res_convdown_forward(params, x, compute_dtype=jnp.bfloat16,
                             out_dtype=jnp.bfloat16))
    assert out_bf16.shape == (2, out_ch, 8, 8), out_bf16.shape
    np.testing.assert_allclose(np.asarray(out_bf16, dtype=np.float32),
                               np.asarray(ref), atol=1.5e-1, rtol=1.5e-1)

    print("KERNEL_OK")
</pallas_src>

<mosaic_0001>
module attributes {stable_mosaic.version = 11 : i64} {
  func.func @_res_convdown_kernel(%arg0: i32, %arg1: memref<1x72x128xf32, #tpu.memory_space<vmem>>, %arg2: memref<9x1x128xf32, #tpu.memory_space<vmem>>, %arg3: memref<1x128xf32, #tpu.memory_space<vmem>>, %arg4: memref<8x72xf32, #tpu.memory_space<vmem>>, %arg5: memref<8x1xf32, #tpu.memory_space<vmem>>, %arg6: memref<32x72xf32, #tpu.memory_space<vmem>>, %arg7: memref<32x1xf32, #tpu.memory_space<vmem>>, %arg8: memref<9x16x16xf32, #tpu.memory_space<vmem>>, %arg9: memref<16x1xf32, #tpu.memory_space<vmem>>, %arg10: memref<1x16x128xf32, #tpu.memory_space<vmem>>) attributes {dimension_semantics = [#tpu.dimension_semantics<parallel>], iteration_bounds = array<i64: 2>, scalar_prefetch = 0 : i64, scratch_operands = 0 : i64, tpu.core_type = #tpu.core_type<tc>, window_params = [{transform_indices = @transform_0, window_bounds = array<i64: 1, 72, 128>}, {pipeline_mode = #tpu.pipeline_mode<synchronous>, transform_indices = @transform_1, window_bounds = array<i64: 9, 1, 128>}, {pipeline_mode = #tpu.pipeline_mode<synchronous>, transform_indices = @transform_2, window_bounds = array<i64: 1, 128>}, {pipeline_mode = #tpu.pipeline_mode<synchronous>, transform_indices = @transform_3, window_bounds = array<i64: 8, 72>}, {pipeline_mode = #tpu.pipeline_mode<synchronous>, transform_indices = @transform_4, window_bounds = array<i64: 8, 1>}, {pipeline_mode = #tpu.pipeline_mode<synchronous>, transform_indices = @transform_5, window_bounds = array<i64: 32, 72>}, {pipeline_mode = #tpu.pipeline_mode<synchronous>, transform_indices = @transform_6, window_bounds = array<i64: 32, 1>}, {pipeline_mode = #tpu.pipeline_mode<synchronous>, transform_indices = @transform_7, window_bounds = array<i64: 9, 16, 16>}, {pipeline_mode = #tpu.pipeline_mode<synchronous>, transform_indices = @transform_8, window_bounds = array<i64: 16, 1>}, {transform_indices = @transform_9, window_bounds = array<i64: 1, 16, 128>}]} {
    %c0 = arith.constant 0 : index
    %c0_0 = arith.constant 0 : index
    %0 = vector.load %arg3[%c0, %c0_0] : memref<1x128xf32, #tpu.memory_space<vmem>>, vector<1x128xf32>
    %c0_1 = arith.constant 0 : index
    %c0_2 = arith.constant 0 : index
    %1 = vector.load %arg4[%c0_1, %c0_2] : memref<8x72xf32, #tpu.memory_space<vmem>>, vector<8x72xf32>
    %c0_3 = arith.constant 0 : index
    %c0_4 = arith.constant 0 : index
    %c0_5 = arith.constant 0 : index
    %2 = vector.load %arg1[%c0_3, %c0_4, %c0_5] : memref<1x72x128xf32, #tpu.memory_space<vmem>>, vector<1x72x128xf32>
    %3 = vector.shape_cast %2 : vector<1x72x128xf32> to vector<72x128xf32>
    %cst = arith.constant dense<0.000000e+00> : vector<8x128xf32>
    %4 = tpu.matmul %1, %3, %cst {dimension_numbers = #tpu.dot_dimension_numbers<[1], [0], [0], [1], [0, 0, 1, 1], [], []>} : vector<8x72xf32>, vector<72x128xf32>, vector<8x128xf32> -> vector<8x128xf32>
    %c0_6 = arith.constant 0 : index
    %c0_7 = arith.constant 0 : index
    %5 = vector.load %arg5[%c0_6, %c0_7] : memref<8x1xf32, #tpu.memory_space<vmem>>, vector<8x1xf32>
    %6 = vector.broadcast %5 : vector<8x1xf32> to vector<8x128xf32>
    %7 = arith.addf %4, %6 : vector<8x128xf32>
    %c9_i32 = arith.constant 9 : i32
    %8 = tpu.dynamic_rotate %7 by %c9_i32 dim 1 : vector<8x128xf32>, i32 -> vector<8x128xf32>
    %c0_8 = arith.constant 0 : index
    %c0_9 = arith.constant 0 : index
    %c0_10 = arith.constant 0 : index
    %9 = vector.load %arg2[%c0_8, %c0_9, %c0_10] : memref<9x1x128xf32, #tpu.memory_space<vmem>>, vector<1x1x128xf32>
    %10 = vector.shape_cast %9 : vector<1x1x128xf32> to vector<1x128xf32>
    %11 = vector.broadcast %10 : vector<1x128xf32> to vector<8x128xf32>
    %12 = arith.mulf %8, %11 : vector<8x128xf32>
    %c8_i32 = arith.constant 8 : i32
    %13 = tpu.dynamic_rotate %7 by %c8_i32 dim 1 : vector<8x128xf32>, i32 -> vector<8x128xf32>
    %c1 = arith.constant 1 : index
    %c0_11 = arith.constant 0 : index
    %c0_12 = arith.constant 0 : index
    %14 = vector.load %arg2[%c1, %c0_11, %c0_12] : memref<9x1x128xf32, #tpu.memory_space<vmem>>, vector<1x1x128xf32>
    %15 = vector.shape_cast %14 : vector<1x1x128xf32> to vector<1x128xf32>
    %16 = vector.broadcast %15 : vector<1x128xf32> to vector<8x128xf32>
    %17 = arith.mulf %13, %16 : vector<8x128xf32>
    %c7_i32 = arith.constant 7 : i32
    %18 = tpu.dynamic_rotate %7 by %c7_i32 dim 1 : vector<8x128xf32>, i32 -> vector<8x128xf32>
    %c2 = arith.constant 2 : index
    %c0_13 = arith.constant 0 : index
    %c0_14 = arith.constant 0 : index
    %19 = vector.load %arg2[%c2, %c0_13, %c0_14] : memref<9x1x128xf32, #tpu.memory_space<vmem>>, vector<1x1x128xf32>
    %20 = vector.shape_cast %19 : vector<1x1x128xf32> to vector<1x128xf32>
    %21 = vector.broadcast %20 : vector<1x128xf32> to vector<8x128xf32>
    %22 = arith.mulf %18, %21 : vector<8x128xf32>
    %c1_i32 = arith.constant 1 : i32
    %23 = tpu.dynamic_rotate %7 by %c1_i32 dim 1 : vector<8x128xf32>, i32 -> vector<8x128xf32>
    %c3 = arith.constant 3 : index
    %c0_15 = arith.constant 0 : index
    %c0_16 = arith.constant 0 : index
    %24 = vector.load %arg2[%c3, %c0_15, %c0_16] : memref<9x1x128xf32, #tpu.memory_space<vmem>>, vector<1x1x128xf32>
    %25 = vector.shape_cast %24 : vector<1x1x128xf32> to vector<1x128xf32>
    %26 = vector.broadcast %25 : vector<1x128xf32> to vector<8x128xf32>
    %27 = arith.mulf %23, %26 : vector<8x128xf32>
    %c4 = arith.constant 4 : index
    %c0_17 = arith.constant 0 : index
    %c0_18 = arith.constant 0 : index
    %28 = vector.load %arg2[%c4, %c0_17, %c0_18] : memref<9x1x128xf32, #tpu.memory_space<vmem>>, vector<1x1x128xf32>
    %29 = vector.shape_cast %28 : vector<1x1x128xf32> to vector<1x128xf32>
    %30 = vector.broadcast %29 : vector<1x128xf32> to vector<8x128xf32>
    %31 = arith.mulf %7, %30 : vector<8x128xf32>
    %c127_i32 = arith.constant 127 : i32
    %32 = tpu.dynamic_rotate %7 by %c127_i32 dim 1 : vector<8x128xf32>, i32 -> vector<8x128xf32>
    %c5 = arith.constant 5 : index
    %c0_19 = arith.constant 0 : index
    %c0_20 = arith.constant 0 : index
    %33 = vector.load %arg2[%c5, %c0_19, %c0_20] : memref<9x1x128xf32, #tpu.memory_space<vmem>>, vector<1x1x128xf32>
    %34 = vector.shape_cast %33 : vector<1x1x128xf32> to vector<1x128xf32>
    %35 = vector.broadcast %34 : vector<1x128xf32> to vector<8x128xf32>
    %36 = arith.mulf %32, %35 : vector<8x128xf32>
    %c121_i32 = arith.constant 121 : i32
    %37 = tpu.dynamic_rotate %7 by %c121_i32 dim 1 : vector<8x128xf32>, i32 -> vector<8x128xf32>
    %c6 = arith.constant 6 : index
    %c0_21 = arith.constant 0 : index
    %c0_22 = arith.constant 0 : index
    %38 = vector.load %arg2[%c6, %c0_21, %c0_22] : memref<9x1x128xf32, #tpu.memory_space<vmem>>, vector<1x1x128xf32>
    %39 = vector.shape_cast %38 : vector<1x1x128xf32> to vector<1x128xf32>
    %40 = vector.broadcast %39 : vector<1x128xf32> to vector<8x128xf32>
    %41 = arith.mulf %37, %40 : vector<8x128xf32>
    %c120_i32 = arith.constant 120 : i32
    %42 = tpu.dynamic_rotate %7 by %c120_i32 dim 1 : vector<8x128xf32>, i32 -> vector<8x128xf32>
    %c7 = arith.constant 7 : index
    %c0_23 = arith.constant 0 : index
    %c0_24 = arith.constant 0 : index
    %43 = vector.load %arg2[%c7, %c0_23, %c0_24] : memref<9x1x128xf32, #tpu.memory_space<vmem>>, vector<1x1x128xf32>
    %44 = vector.shape_cast %43 : vector<1x1x128xf32> to vector<1x128xf32>
    %45 = vector.broadcast %44 : vector<1x128xf32> to vector<8x128xf32>
    %46 = arith.mulf %42, %45 : vector<8x128xf32>
    %c119_i32 = arith.constant 119 : i32
    %47 = tpu.dynamic_rotate %7 by %c119_i32 dim 1 : vector<8x128xf32>, i32 -> vector<8x128xf32>
    %c8 = arith.constant 8 : index
    %c0_25 = arith.constant 0 : index
    %c0_26 = arith.constant 0 : index
    %48 = vector.load %arg2[%c8, %c0_25, %c0_26] : memref<9x1x128xf32, #tpu.memory_space<vmem>>, vector<1x1x128xf32>
    %49 = vector.shape_cast %48 : vector<1x1x128xf32> to vector<1x128xf32>
    %50 = vector.broadcast %49 : vector<1x128xf32> to vector<8x128xf32>
    %51 = arith.mulf %47, %50 : vector<8x128xf32>
    %52 = tpu.concatenate %12, %17, %22, %27, %31, %36, %41, %46, %51 in 0 : vector<8x128xf32>, vector<8x128xf32>, vector<8x128xf32>, vector<8x128xf32>, vector<8x128xf32>, vector<8x128xf32>, vector<8x128xf32>, vector<8x128xf32>, vector<8x128xf32> -> vector<72x128xf32>
    %c0_27 = arith.constant 0 : index
    %c0_28 = arith.constant 0 : index
    %53 = vector.load %arg6[%c0_27, %c0_28] : memref<32x72xf32, #tpu.memory_space<vmem>>, vector<32x72xf32>
    %cst_29 = arith.constant dense<0.000000e+00> : vector<32x128xf32>
    %54 = tpu.matmul %53, %52, %cst_29 {dimension_numbers = #tpu.dot_dimension_numbers<[1], [0], [0], [1], [0, 0, 1, 1], [], []>} : vector<32x72xf32>, vector<72x128xf32>, vector<32x128xf32> -> vector<32x128xf32>
    %c0_30 = arith.constant 0 : index
    %c0_31 = arith.constant 0 : index
    %55 = vector.load %arg7[%c0_30, %c0_31] : memref<32x1xf32, #tpu.memory_space<vmem>>, vector<32x1xf32>
    %56 = vector.broadcast %55 : vector<32x1xf32> to vector<32x128xf32>
    %57 = arith.addf %54, %56 : vector<32x128xf32>
    %58 = vector.extract_strided_slice %57 {offsets = [16, 0], sizes = [16, 128], strides = [1, 1]} : vector<32x128xf32> to vector<16x128xf32>
    %59 = vector.extract_strided_slice %57 {offsets = [0, 0], sizes = [16, 128], strides = [1, 1]} : vector<32x128xf32> to vector<16x128xf32>
    %60 = vector.broadcast %0 : vector<1x128xf32> to vector<16x128xf32>
    %61 = arith.mulf %59, %60 : vector<16x128xf32>
    %cst_32 = arith.constant dense<0.000000e+00> : vector<16xf32>
    %62 = vector.multi_reduction <add>, %61, %cst_32 [1] : vector<16x128xf32> to vector<16xf32>
    %63 = vector.shape_cast %62 : vector<16xf32> to vector<16x1xf32>
    %cst_33 = arith.constant 1.562500e-02 : f32
    %64 = vector.broadcast %cst_33 : f32 to vector<16x1xf32>
    %65 = arith.mulf %63, %64 : vector<16x1xf32>
    %66 = arith.mulf %61, %61 : vector<16x128xf32>
    %cst_34 = arith.constant dense<0.000000e+00> : vector<16xf32>
    %67 = vector.multi_reduction <add>, %66, %cst_34 [1] : vector<16x128xf32> to vector<16xf32>
    %68 = vector.shape_cast %67 : vector<16xf32> to vector<16x1xf32>
    %cst_35 = arith.constant 1.562500e-02 : f32
    %69 = vector.broadcast %cst_35 : f32 to vector<16x1xf32>
    %70 = arith.mulf %68, %69 : vector<16x1xf32>
    %71 = arith.mulf %65, %65 : vector<16x1xf32>
    %72 = arith.subf %70, %71 : vector<16x1xf32>
    %cst_36 = arith.constant 0.000000e+00 : f32
    %73 = vector.broadcast %cst_36 : f32 to vector<16x1xf32>
    %74 = arith.maximumf %72, %73 : vector<16x1xf32>
    %75 = vector.broadcast %65 : vector<16x1xf32> to vector<16x128xf32>
    %76 = arith.subf %59, %75 : vector<16x128xf32>
    %cst_37 = arith.constant 9.99999974E-6 : f32
    %77 = vector.broadcast %cst_37 : f32 to vector<16x1xf32>
    %78 = arith.addf %74, %77 : vector<16x1xf32>
    %79 = math.rsqrt %78 : vector<16x1xf32>
    %80 = vector.broadcast %79 : vector<16x1xf32> to vector<16x128xf32>
    %81 = arith.mulf %76, %80 : vector<16x128xf32>
    %cst_38 = arith.constant 0.000000e+00 : f32
    %82 = vector.broadcast %cst_38 : f32 to vector<16x128xf32>
    %83 = arith.cmpf oge, %81, %82 : vector<16x128xf32>
    %cst_39 = arith.constant 2.000000e-01 : f32
    %84 = vector.broadcast %cst_39 : f32 to vector<16x128xf32>
    %85 = arith.mulf %84, %81 : vector<16x128xf32>
    %86 = arith.select %83, %81, %85 : vector<16x128xi1>, vector<16x128xf32>
    %c0_40 = arith.constant 0 : index
    %c0_41 = arith.constant 0 : index
    %c0_42 = arith.constant 0 : index
    %87 = vector.load %arg8[%c0_40, %c0_41, %c0_42] : memref<9x16x16xf32, #tpu.memory_space<vmem>>, vector<1x16x16xf32>
    %88 = vector.shape_cast %87 : vector<1x16x16xf32> to vector<16x16xf32>
    %c9_i32_43 = arith.constant 9 : i32
    %89 = tpu.dynamic_rotate %86 by %c9_i32_43 dim 1 : vector<16x128xf32>, i32 -> vector<16x128xf32>
    %c0_44 = arith.constant 0 : index
    %c0_45 = arith.constant 0 : index
    %c0_46 = arith.constant 0 : index
    %90 = vector.load %arg2[%c0_44, %c0_45, %c0_46] : memref<9x1x128xf32, #tpu.memory_space<vmem>>, vector<1x1x128xf32>
    %91 = vector.shape_cast %90 : vector<1x1x128xf32> to vector<1x128xf32>
    %92 = vector.broadcast %91 : vector<1x128xf32> to vector<16x128xf32>
    %93 = arith.mulf %89, %92 : vector<16x128xf32>
    %cst_47 = arith.constant dense<0.000000e+00> : vector<16x128xf32>
    %94 = tpu.matmul %88, %93, %cst_47 {dimension_numbers = #tpu.dot_dimension_numbers<[1], [0], [0], [1], [0, 0, 1, 1], [], []>} : vector<16x16xf32>, vector<16x128xf32>, vector<16x128xf32> -> vector<16x128xf32>
    %c1_48 = arith.constant 1 : index
    %c0_49 = arith.constant 0 : index
    %c0_50 = arith.constant 0 : index
    %95 = vector.load %arg8[%c1_48, %c0_49, %c0_50] : memref<9x16x16xf32, #tpu.memory_space<vmem>>, vector<1x16x16xf32>
    %96 = vector.shape_cast %95 : vector<1x16x16xf32> to vector<16x16xf32>
    %c8_i32_51 = arith.constant 8 : i32
    %97 = tpu.dynamic_rotate %86 by %c8_i32_51 dim 1 : vector<16x128xf32>, i32 -> vector<16x128xf32>
    %c1_52 = arith.constant 1 : index
    %c0_53 = arith.constant 0 : index
    %c0_54 = arith.constant 0 : index
    %98 = vector.load %arg2[%c1_52, %c0_53, %c0_54] : memref<9x1x128xf32, #tpu.memory_space<vmem>>, vector<1x1x128xf32>
    %99 = vector.shape_cast %98 : vector<1x1x128xf32> to vector<1x128xf32>
    %100 = vector.broadcast %99 : vector<1x128xf32> to vector<16x128xf32>
    %101 = arith.mulf %97, %100 : vector<16x128xf32>
    %cst_55 = arith.constant dense<0.000000e+00> : vector<16x128xf32>
    %102 = tpu.matmul %96, %101, %cst_55 {dimension_numbers = #tpu.dot_dimension_numbers<[1], [0], [0], [1], [0, 0, 1, 1], [], []>} : vector<16x16xf32>, vector<16x128xf32>, vector<16x128xf32> -> vector<16x128xf32>
    %103 = arith.addf %94, %102 : vector<16x128xf32>
    %c2_56 = arith.constant 2 : index
    %c0_57 = arith.constant 0 : index
    %c0_58 = arith.constant 0 : index
    %104 = vector.load %arg8[%c2_56, %c0_57, %c0_58] : memref<9x16x16xf32, #tpu.memory_space<vmem>>, vector<1x16x16xf32>
    %105 = vector.shape_cast %104 : vector<1x16x16xf32> to vector<16x16xf32>
    %c7_i32_59 = arith.constant 7 : i32
    %106 = tpu.dynamic_rotate %86 by %c7_i32_59 dim 1 : vector<16x128xf32>, i32 -> vector<16x128xf32>
    %c2_60 = arith.constant 2 : index
    %c0_61 = arith.constant 0 : index
    %c0_62 = arith.constant 0 : index
    %107 = vector.load %arg2[%c2_60, %c0_61, %c0_62] : memref<9x1x128xf32, #tpu.memory_space<vmem>>, vector<1x1x128xf32>
    %108 = vector.shape_cast %107 : vector<1x1x128xf32> to vector<1x128xf32>
    %109 = vector.broadcast %108 : vector<1x128xf32> to vector<16x128xf32>
    %110 = arith.mulf %106, %109 : vector<16x128xf32>
    %cst_63 = arith.constant dense<0.000000e+00> : vector<16x128xf32>
    %111 = tpu.matmul %105, %110, %cst_63 {dimension_numbers = #tpu.dot_dimension_numbers<[1], [0], [0], [1], [0, 0, 1, 1], [], []>} : vector<16x16xf32>, vector<16x128xf32>, vector<16x128xf32> -> vector<16x128xf32>
    %112 = arith.addf %103, %111 : vector<16x128xf32>
    %c3_64 = arith.constant 3 : index
    %c0_65 = arith.constant 0 : index
    %c0_66 = arith.constant 0 : index
    %113 = vector.load %arg8[%c3_64, %c0_65, %c0_66] : memref<9x16x16xf32, #tpu.memory_space<vmem>>, vector<1x16x16xf32>
    %114 = vector.shape_cast %113 : vector<1x16x16xf32> to vector<16x16xf32>
    %c1_i32_67 = arith.constant 1 : i32
    %115 = tpu.dynamic_rotate %86 by %c1_i32_67 dim 1 : vector<16x128xf32>, i32 -> vector<16x128xf32>
    %c3_68 = arith.constant 3 : index
    %c0_69 = arith.constant 0 : index
    %c0_70 = arith.constant 0 : index
    %116 = vector.load %arg2[%c3_68, %c0_69, %c0_70] : memref<9x1x128xf32, #tpu.memory_space<vmem>>, vector<1x1x128xf32>
    %117 = vector.shape_cast %116 : vector<1x1x128xf32> to vector<1x128xf32>
    %118 = vector.broadcast %117 : vector<1x128xf32> to vector<16x128xf32>
    %119 = arith.mulf %115, %118 : vector<16x128xf32>
    %cst_71 = arith.constant dense<0.000000e+00> : vector<16x128xf32>
    %120 = tpu.matmul %114, %119, %cst_71 {dimension_numbers = #tpu.dot_dimension_numbers<[1], [0], [0], [1], [0, 0, 1, 1], [], []>} : vector<16x16xf32>, vector<16x128xf32>, vector<16x128xf32> -> vector<16x128xf32>
    %121 = arith.addf %112, %120 : vector<16x128xf32>
    %c4_72 = arith.constant 4 : index
    %c0_73 = arith.constant 0 : index
    %c0_74 = arith.constant 0 : index
    %122 = vector.load %arg8[%c4_72, %c0_73, %c0_74] : memref<9x16x16xf32, #tpu.memory_space<vmem>>, vector<1x16x16xf32>
    %123 = vector.shape_cast %122 : vector<1x16x16xf32> to vector<16x16xf32>
    %c4_75 = arith.constant 4 : index
    %c0_76 = arith.constant 0 : index
    %c0_77 = arith.constant 0 : index
    %124 = vector.load %arg2[%c4_75, %c0_76, %c0_77] : memref<9x1x128xf32, #tpu.memory_space<vmem>>, vector<1x1x128xf32>
    %125 = vector.shape_cast %124 : vector<1x1x128xf32> to vector<1x128xf32>
    %126 = vector.broadcast %125 : vector<1x128xf32> to vector<16x128xf32>
    %127 = arith.mulf %86, %126 : vector<16x128xf32>
    %cst_78 = arith.constant dense<0.000000e+00> : vector<16x128xf32>
    %128 = tpu.matmul %123, %127, %cst_78 {dimension_numbers = #tpu.dot_dimension_numbers<[1], [0], [0], [1], [0, 0, 1, 1], [], []>} : vector<16x16xf32>, vector<16x128xf32>, vector<16x128xf32> -> vector<16x128xf32>
    %129 = arith.addf %121, %128 : vector<16x128xf32>
    %c5_79 = arith.constant 5 : index
    %c0_80 = arith.constant 0 : index
    %c0_81 = arith.constant 0 : index
    %130 = vector.load %arg8[%c5_79, %c0_80, %c0_81] : memref<9x16x16xf32, #tpu.memory_space<vmem>>, vector<1x16x16xf32>
    %131 = vector.shape_cast %130 : vector<1x16x16xf32> to vector<16x16xf32>
    %c127_i32_82 = arith.constant 127 : i32
    %132 = tpu.dynamic_rotate %86 by %c127_i32_82 dim 1 : vector<16x128xf32>, i32 -> vector<16x128xf32>
    %c5_83 = arith.constant 5 : index
    %c0_84 = arith.constant 0 : index
    %c0_85 = arith.constant 0 : index
    %133 = vector.load %arg2[%c5_83, %c0_84, %c0_85] : memref<9x1x128xf32, #tpu.memory_space<vmem>>, vector<1x1x128xf32>
    %134 = vector.shape_cast %133 : vector<1x1x128xf32> to vector<1x128xf32>
    %135 = vector.broadcast %134 : vector<1x128xf32> to vector<16x128xf32>
    %136 = arith.mulf %132, %135 : vector<16x128xf32>
    %cst_86 = arith.constant dense<0.000000e+00> : vector<16x128xf32>
    %137 = tpu.matmul %131, %136, %cst_86 {dimension_numbers = #tpu.dot_dimension_numbers<[1], [0], [0], [1], [0, 0, 1, 1], [], []>} : vector<16x16xf32>, vector<16x128xf32>, vector<16x128xf32> -> vector<16x128xf32>
    %138 = arith.addf %129, %137 : vector<16x128xf32>
    %c6_87 = arith.constant 6 : index
    %c0_88 = arith.constant 0 : index
    %c0_89 = arith.constant 0 : index
    %139 = vector.load %arg8[%c6_87, %c0_88, %c0_89] : memref<9x16x16xf32, #tpu.memory_space<vmem>>, vector<1x16x16xf32>
    %140 = vector.shape_cast %139 : vector<1x16x16xf32> to vector<16x16xf32>
    %c121_i32_90 = arith.constant 121 : i32
    %141 = tpu.dynamic_rotate %86 by %c121_i32_90 dim 1 : vector<16x128xf32>, i32 -> vector<16x128xf32>
    %c6_91 = arith.constant 6 : index
    %c0_92 = arith.constant 0 : index
    %c0_93 = arith.constant 0 : index
    %142 = vector.load %arg2[%c6_91, %c0_92, %c0_93] : memref<9x1x128xf32, #tpu.memory_space<vmem>>, vector<1x1x128xf32>
    %143 = vector.shape_cast %142 : vector<1x1x128xf32> to vector<1x128xf32>
    %144 = vector.broadcast %143 : vector<1x128xf32> to vector<16x128xf32>
    %145 = arith.mulf %141, %144 : vector<16x128xf32>
    %cst_94 = arith.constant dense<0.000000e+00> : vector<16x128xf32>
    %146 = tpu.matmul %140, %145, %cst_94 {dimension_numbers = #tpu.dot_dimension_numbers<[1], [0], [0], [1], [0, 0, 1, 1], [], []>} : vector<16x16xf32>, vector<16x128xf32>, vector<16x128xf32> -> vector<16x128xf32>
    %147 = arith.addf %138, %146 : vector<16x128xf32>
    %c7_95 = arith.constant 7 : index
    %c0_96 = arith.constant 0 : index
    %c0_97 = arith.constant 0 : index
    %148 = vector.load %arg8[%c7_95, %c0_96, %c0_97] : memref<9x16x16xf32, #tpu.memory_space<vmem>>, vector<1x16x16xf32>
    %149 = vector.shape_cast %148 : vector<1x16x16xf32> to vector<16x16xf32>
    %c120_i32_98 = arith.constant 120 : i32
    %150 = tpu.dynamic_rotate %86 by %c120_i32_98 dim 1 : vector<16x128xf32>, i32 -> vector<16x128xf32>
    %c7_99 = arith.constant 7 : index
    %c0_100 = arith.constant 0 : index
    %c0_101 = arith.constant 0 : index
    %151 = vector.load %arg2[%c7_99, %c0_100, %c0_101] : memref<9x1x128xf32, #tpu.memory_space<vmem>>, vector<1x1x128xf32>
    %152 = vector.shape_cast %151 : vector<1x1x128xf32> to vector<1x128xf32>
    %153 = vector.broadcast %152 : vector<1x128xf32> to vector<16x128xf32>
    %154 = arith.mulf %150, %153 : vector<16x128xf32>
    %cst_102 = arith.constant dense<0.000000e+00> : vector<16x128xf32>
    %155 = tpu.matmul %149, %154, %cst_102 {dimension_numbers = #tpu.dot_dimension_numbers<[1], [0], [0], [1], [0, 0, 1, 1], [], []>} : vector<16x16xf32>, vector<16x128xf32>, vector<16x128xf32> -> vector<16x128xf32>
    %156 = arith.addf %147, %155 : vector<16x128xf32>
    %c8_103 = arith.constant 8 : index
    %c0_104 = arith.constant 0 : index
    %c0_105 = arith.constant 0 : index
    %157 = vector.load %arg8[%c8_103, %c0_104, %c0_105] : memref<9x16x16xf32, #tpu.memory_space<vmem>>, vector<1x16x16xf32>
    %158 = vector.shape_cast %157 : vector<1x16x16xf32> to vector<16x16xf32>
    %c119_i32_106 = arith.constant 119 : i32
    %159 = tpu.dynamic_rotate %86 by %c119_i32_106 dim 1 : vector<16x128xf32>, i32 -> vector<16x128xf32>
    %c8_107 = arith.constant 8 : index
    %c0_108 = arith.constant 0 : index
    %c0_109 = arith.constant 0 : index
    %160 = vector.load %arg2[%c8_107, %c0_108, %c0_109] : memref<9x1x128xf32, #tpu.memory_space<vmem>>, vector<1x1x128xf32>
    %161 = vector.shape_cast %160 : vector<1x1x128xf32> to vector<1x128xf32>
    %162 = vector.broadcast %161 : vector<1x128xf32> to vector<16x128xf32>
    %163 = arith.mulf %159, %162 : vector<16x128xf32>
    %cst_110 = arith.constant dense<0.000000e+00> : vector<16x128xf32>
    %164 = tpu.matmul %158, %163, %cst_110 {dimension_numbers = #tpu.dot_dimension_numbers<[1], [0], [0], [1], [0, 0, 1, 1], [], []>} : vector<16x16xf32>, vector<16x128xf32>, vector<16x128xf32> -> vector<16x128xf32>
    %165 = arith.addf %156, %164 : vector<16x128xf32>
    %c0_111 = arith.constant 0 : index
    %c0_112 = arith.constant 0 : index
    %166 = vector.load %arg9[%c0_111, %c0_112] : memref<16x1xf32, #tpu.memory_space<vmem>>, vector<16x1xf32>
    %167 = vector.broadcast %166 : vector<16x1xf32> to vector<16x128xf32>
    %168 = arith.addf %165, %167 : vector<16x128xf32>
    %169 = vector.broadcast %0 : vector<1x128xf32> to vector<16x128xf32>
    %170 = arith.mulf %168, %169 : vector<16x128xf32>
    %cst_113 = arith.constant dense<0.000000e+00> : vector<16xf32>
    %171 = vector.multi_reduction <add>, %170, %cst_113 [1] : vector<16x128xf32> to vector<16xf32>
    %172 = vector.shape_cast %171 : vector<16xf32> to vector<16x1xf32>
    %cst_114 = arith.constant 1.562500e-02 : f32
    %173 = vector.broadcast %cst_114 : f32 to vector<16x1xf32>
    %174 = arith.mulf %172, %173 : vector<16x1xf32>
    %175 = arith.mulf %170, %170 : vector<16x128xf32>
    %cst_115 = arith.constant dense<0.000000e+00> : vector<16xf32>
    %176 = vector.multi_reduction <add>, %175, %cst_115 [1] : vector<16x128xf32> to vector<16xf32>
    %177 = vector.shape_cast %176 : vector<16xf32> to vector<16x1xf32>
    %cst_116 = arith.constant 1.562500e-02 : f32
    %178 = vector.broadcast %cst_116 : f32 to vector<16x1xf32>
    %179 = arith.mulf %177, %178 : vector<16x1xf32>
    %180 = arith.mulf %174, %174 : vector<16x1xf32>
    %181 = arith.subf %179, %180 : vector<16x1xf32>
    %cst_117 = arith.constant 0.000000e+00 : f32
    %182 = vector.broadcast %cst_117 : f32 to vector<16x1xf32>
    %183 = arith.maximumf %181, %182 : vector<16x1xf32>
    %184 = vector.broadcast %174 : vector<16x1xf32> to vector<16x128xf32>
    %185 = arith.subf %168, %184 : vector<16x128xf32>
    %cst_118 = arith.constant 9.99999974E-6 : f32
    %186 = vector.broadcast %cst_118 : f32 to vector<16x1xf32>
    %187 = arith.addf %183, %186 : vector<16x1xf32>
    %188 = math.rsqrt %187 : vector<16x1xf32>
    %189 = vector.broadcast %188 : vector<16x1xf32> to vector<16x128xf32>
    %190 = arith.mulf %185, %189 : vector<16x128xf32>
    %191 = arith.addf %58, %190 : vector<16x128xf32>
    %cst_119 = arith.constant 0.000000e+00 : f32
    %192 = vector.broadcast %cst_119 : f32 to vector<16x128xf32>
    %193 = arith.cmpf oge, %191, %192 : vector<16x128xf32>
    %cst_120 = arith.constant 2.000000e-01 : f32
    %194 = vector.broadcast %cst_120 : f32 to vector<16x128xf32>
    %195 = arith.mulf %194, %191 : vector<16x128xf32>
    %196 = arith.select %193, %191, %195 : vector<16x128xi1>, vector<16x128xf32>
    %c0_121 = arith.constant 0 : index
    %c0_122 = arith.constant 0 : index
    %c0_123 = arith.constant 0 : index
    %197 = vector.load %arg10[%c0_121, %c0_122, %c0_123] : memref<1x16x128xf32, #tpu.memory_space<vmem>>, vector<1x16x128xf32>
    %198 = vector.shape_cast %197 : vector<1x16x128xf32> to vector<16x128xf32>
    %199 = vector.shape_cast %196 : vector<16x128xf32> to vector<1x16x128xf32>
    tpu.vector_store %arg10[%c0_121, %c0_122, %c0_123], %199 {strides = array<i32>} : memref<1x16x128xf32, #tpu.memory_space<vmem>>, vector<1x16x128xf32>,
    return
  }
  func.func @transform_0(%arg0: i32) -> (i32, i32, i32) {
    %c0_i32 = arith.constant 0 : i32
    %c0_i32_0 = arith.constant 0 : i32
    %c0_i32_1 = arith.constant 0 : i32
    return %arg0, %c0_i32, %c0_i32_0 : i32, i32, i32
  }
  func.func @transform_1(%arg0: i32) -> (i32, i32, i32) {
    %c0_i32 = arith.constant 0 : i32
    %c0_i32_0 = arith.constant 0 : i32
    %c0_i32_1 = arith.constant 0 : i32
    %c0_i32_2 = arith.constant 0 : i32
    return %c0_i32, %c0_i32_0, %c0_i32_1 : i32, i32, i32
  }
  func.func @transform_2(%arg0: i32) -> (i32, i32) {
    %c0_i32 = arith.constant 0 : i32
    %c0_i32_0 = arith.constant 0 : i32
    %c0_i32_1 = arith.constant 0 : i32
    return %c0_i32, %c0_i32_0 : i32, i32
  }
  func.func @transform_3(%arg0: i32) -> (i32, i32) {
    %c0_i32 = arith.constant 0 : i32
    %c0_i32_0 = arith.constant 0 : i32
    %c0_i32_1 = arith.constant 0 : i32
    return %c0_i32, %c0_i32_0 : i32, i32
  }
  func.func @transform_4(%arg0: i32) -> (i32, i32) {
    %c0_i32 = arith.constant 0 : i32
    %c0_i32_0 = arith.constant 0 : i32
    %c0_i32_1 = arith.constant 0 : i32
    return %c0_i32, %c0_i32_0 : i32, i32
  }
  func.func @transform_5(%arg0: i32) -> (i32, i32) {
    %c0_i32 = arith.constant 0 : i32
    %c0_i32_0 = arith.constant 0 : i32
    %c0_i32_1 = arith.constant 0 : i32
    return %c0_i32, %c0_i32_0 : i32, i32
  }
  func.func @transform_6(%arg0: i32) -> (i32, i32) {
    %c0_i32 = arith.constant 0 : i32
    %c0_i32_0 = arith.constant 0 : i32
    %c0_i32_1 = arith.constant 0 : i32
    return %c0_i32, %c0_i32_0 : i32, i32
  }
  func.func @transform_7(%arg0: i32) -> (i32, i32, i32) {
    %c0_i32 = arith.constant 0 : i32
    %c0_i32_0 = arith.constant 0 : i32
    %c0_i32_1 = arith.constant 0 : i32
    %c0_i32_2 = arith.constant 0 : i32
    return %c0_i32, %c0_i32_0, %c0_i32_1 : i32, i32, i32
  }
  func.func @transform_8(%arg0: i32) -> (i32, i32) {
    %c0_i32 = arith.constant 0 : i32
    %c0_i32_0 = arith.constant 0 : i32
    %c0_i32_1 = arith.constant 0 : i32
    return %c0_i32, %c0_i32_0 : i32, i32
  }
  func.func @transform_9(%arg0: i32) -> (i32, i32, i32) {
    %c0_i32 = arith.constant 0 : i32
    %c0_i32_0 = arith.constant 0 : i32
    %c0_i32_1 = arith.constant 0 : i32
    return %arg0, %c0_i32, %c0_i32_0 : i32, i32, i32
  }
}

</mosaic_0001>

<bundles_post_ra>
// kernel: tpu_custom_call.1
= control target key start
LH: loop header
LB: loop body
LE: loop exit
PB: predicated region body
PF: predicated region fallthrough
CT: control target
= control target key end

     0   :  { %s2664_s0 = inlined_call_operand.hbm [shape: f32[2,72,128], index: 0, kind: input, shape index: {}]   ;;  %s2665_s1 = inlined_call_operand.vmem [shape: f32[9,1,128], index: 1, kind: input, shape index: {}]   ;;  %s2666_s2 = inlined_call_operand.vmem [shape: f32[1,128], index: 2, kind: input, shape index: {}]   ;;  %s2667_s3 = inlined_call_operand.vmem [shape: f32[8,72], index: 3, kind: input, shape index: {}]   ;;  %s2668_s4 = inlined_call_operand.vmem [shape: f32[8,1], index: 4, kind: input, shape index: {}]   ;;  %s2669_s5 = inlined_call_operand.vmem [shape: f32[32,72], index: 5, kind: input, shape index: {}]   ;;  %s2670_s6 = inlined_call_operand.vmem [shape: f32[32,1], index: 6, kind: input, shape index: {}]   ;;  %s2671_s7 = inlined_call_operand.hbm [shape: f32[9,16,16], index: 7, kind: input, shape index: {}]   ;;  %s2672_s8 = inlined_call_operand.vmem [shape: f32[16,1], index: 8, kind: input, shape index: {}]   ;;  %s2673_s9 = inlined_call_operand.hbm [shape: f32[2,16,128], index: 9, kind: output, shape index: {}]  }
   0x1   :  { %2685 = sst [smem:[#allocation13_spill]] %s2671_s7 }
   0x2   :  { %14 = vsyncpa [#allocation3], 0 }
   0x3   :  { %16 = vsyncpa [#allocation3 + $0x1], 0 }
   0x4   :  { %17 = vsyncpa [#allocation6], 0 }
   0x5   :  { %18 = vsyncpa [#allocation4], 0 }
   0x6   :  { %20 = vsyncpa [#allocation4 + $0x1], 0  ;;  %s2276_s30 = smov 0   ;;  %s2278_s10 = smov 0  }
   0x7   :  { %s2280_s11 = smov 0   ;;  %s2282_s12 = smov 0  }
   0x8 LB: > { %s2297_s13 = sadd.s32 4294967295, %s2206_s12   ;;  %s1691_s14 = sadd.s32 4294967294, %s2206_s12   ;;  %s2206_s12 = sphi %s2282_s12, %s2706_s12   ;;  %s2202_s11 = sphi %s2280_s11, %s2710_s11   ;;  %s2198_s10 = sphi %s2278_s10, %s2709_s10   ;;  %s2194_s30 = sphi %s2276_s30, %s2708_s30  }
   0x9   : > { %p46_p0 = scmp.ne.s32.totalorder %s2198_s10, %s2194_s30  ;;  %p2674_p1 = scmp.eq.s32.totalorder %s2297_s13, 0 }
   0xa   : > { %p244_p3 = scmp.eq.s32.totalorder %s1691_s14, 1  ;;  %p1692_p5 = scmp.ge.s32.totalorder %s2206_s12, 1 }
   0xb   : > { %p2306_p4 = por %p2674_p1, %p46_p0  ;;  %p251_p7 = scmp.lt.s32.totalorder %s2206_s12, 3 }
   0xc   : > { %p2311_p6 = por %p244_p3, %p46_p0  ;;  %s2208_s18 = smov [#allocation5]  }
   0xd   : > { %s2686_s15 = scalar_select %p2306_p4, 1, 0 }
   0xe   : > { %s2687_s16 = scalar_select %p2311_p6, 1, 0 }
   0xf   : > { %p2316_p8 = pnand %p1692_p5, %p251_p7  ;;  %s281_s19 = sshll.u32 %s2208_s18, 4  ;;  %s2320_s19 = int_to_ptr.vmem [resolvable:$true] %s281_s19 }
  0x10   : > { %s2332_s21 = sadd.s32 1, %s2206_s12   ;;  %s33_s22 = sadd.s32 1, %s2202_s11 }
  0x11   : > { %s2688_s17 = scalar_select %p2316_p8, 1, 0 }
  0x12   : > { %p2004_p9 = pneg %p2316_p8  ;;  %2690 = sst [smem:[#allocation11_spill]] %s2332_s21 }
  0x13   : > { %s30_s23 = ssub.s32 %s2206_s12, %s2332_s21  ;;  %s2691_s7 = sld [smem:[#allocation13_spill]] }
  0x14   : > { %p2327_p11 = pnand %p2004_p9, %p2674_p1 }
  0x16   : > { %p2080_p13 = pneg %p2327_p11 }
  0x19   : > { %s2078_s26 = scalar_lea.hbm %s2691_s7, 2304 }
  0x1a   : > { %p2079_p12 = scmp.ne.s32.totalorder %s2691_s7, %s2078_s26  ;;  %p2085_p5 = scmp.lt.u32.totalorder %s2078_s26, %s2691_s7 }
  0x1c   : > { %p2081_p0 = pnand %p2080_p13, %p2079_p12 }
  0x1e   : > { %p2082_p3 = pneg %p2081_p0 }
  0x20   : > { %p2087_p7 = pnand %p2085_p5, %p2082_p3 }
  0x22   : > { %2090 = shalt.err (!%p2087_p7)
}
  0x23   : > { %s2091_s18 = scalar_lea.vmem %s2320_s19, 2304  ;;  %p2099_p2 = scmp.lt.s32.totalorder %s2320_s19, %s2320_s19 }
  0x24   : > { %p2092_p9 = scmp.ne.s32.totalorder %s2320_s19, %s2091_s18  ;;  %p2100_p6 = scmp.lt.s32.totalorder %s2091_s18, %s2091_s18 }
  0x26   : > { %p2094_p10 = pnand %p2092_p9, %p2080_p13  ;;  %p2101_p4 = por %p2100_p6, %p2099_p2 }
  0x28   : > { %p2095_p1 = pneg %p2094_p10 }
  0x2a   : > { %p2102_p8 = pnand %p2101_p4, %p2095_p1 }
  0x2c   : > { %2105 = shalt.err (!%p2102_p8)
}
  0x2d   : > { %s2679_s24 = smov 128   ;;  %s2680_s25 = smov 8  }
  0x2e   : > { %2007 = dma.hbm_to_vmem [thread:$0]  (!%p2327_p11), %s2691_s7, 2304, %s2320_s19, [#allocation6], %s2679_s24, %s2679_s24, %s2680_s25  }
  0x2f   : > { %p31_p1 = scmp.eq.s32.totalorder %s30_s23, 0  ;;  %p40_p2 = scmp.ne.s32.totalorder %s2202_s11, %s2198_s10 }
  0x30   : > { %p41_p4 = scmp.eq.s32.totalorder %s2206_s12, 0  ;;  %p2017_p6 = scmp.lt.s32.totalorder %s2206_s12, 2 }
  0x31   : > { %s2366_s28 = scalar_select %p31_p1, %s2202_s11, %s33_s22  }
  0x32   : > { %p42_p8 = por %p41_p4, %p40_p2  ;;  %p2693_p10 = scmp.eq.s32.totalorder %s2297_s13, 1 }
  0x33   : > { %2692 = sst [smem:[#allocation12_spill]] %s2366_s28  ;;  %s298_s20 = sand.u32 1, %s2202_s11  }
  0x34   : > { %p2370_p12 = por %p2693_p10, %p40_p2  ;;  %s1994_s14 = smul.u32 1152, %s2206_s12 }
  0x35   : > { %s1993_s18 = smul.u32 72, %s298_s20  ;;  %p2376_p13 = pnand %p2017_p6, %p42_p8 }
  0x36   : > { %s2383_s22 = scalar_lea.hbm %s2664_s0, %s1994_s14  ;;  %s2387_s24 = scalar_lea.sflag [#allocation3], %s298_s20 }
  0x37   : > { %s302_s26 = scalar_lea.vmem [#allocation2], %s1993_s18  ;;  %s2106_s25 = scalar_lea.hbm %s2383_s22, 1152 }
  0x38   : > { %s309_s27 = sshll.u32 %s302_s26, 4  ;;  %p2107_p11 = scmp.ne.s32.totalorder %s2383_s22, %s2106_s25  ;;  %s2385_s27 = int_to_ptr.vmem [resolvable:$true] %s309_s27 }
  0x39   : > { %p2108_p0 = pneg %p2376_p13  ;;  %s2111_s23 = scalar_lea.hbm %s2664_s0, 2304 }
  0x3a   : > { %p2112_p7 = scmp.lt.u32.totalorder %s2383_s22, %s2664_s0  ;;  %p2113_p9 = scmp.lt.u32.totalorder %s2111_s23, %s2106_s25 }
  0x3b   : > { %p2109_p3 = pnand %p2108_p0, %p2107_p11  ;;  %p2115_p2 = scmp.lt.u32.totalorder %s2106_s25, %s2383_s22 }
  0x3c   : > { %p2114_p1 = por %p2113_p9, %p2112_p7 }
  0x3d   : > { %p2110_p5 = pneg %p2109_p3 }
  0x3e   : > { %p2116_p4 = por %p2115_p2, %p2114_p1 }
  0x40   : > { %p2117_p6 = pnand %p2116_p4, %p2110_p5 }
  0x42   : > { %2120 = shalt.err (!%p2117_p6)
}
  0x43   : > { %s2121_s20 = scalar_lea.vmem %s2385_s27, 1152  ;;  %s2211_s18 = smov [#allocation2]  }
  0x44   : > { %p2122_p8 = scmp.ne.s32.totalorder %s2385_s27, %s2121_s20  ;;  %s2126_s26 = sshll.u32 %s2211_s18, 4  ;;  %s2127_s26 = int_to_ptr.vmem [resolvable:$false] %s2126_s26 }
  0x45   : > { %s2128_s7 = scalar_lea.vmem %s2127_s26, 2304  ;;  %p2129_p3 = scmp.lt.s32.totalorder %s2385_s27, %s2127_s26 }
  0x46   : > { %p2124_p10 = pnand %p2122_p8, %p2108_p0  ;;  %p2130_p7 = scmp.lt.s32.totalorder %s2128_s7, %s2121_s20 }
  0x48   : > { %p2125_p11 = pneg %p2124_p10  ;;  %p2131_p9 = por %p2130_p7, %p2129_p3 }
  0x4a   : > { %p2132_p1 = pnand %p2131_p9, %p2125_p11 }
  0x4c   : > { %2135 = shalt.err (!%p2132_p1)
}
  0x4d   : > { %s2696_s25 = smov 8   ;;  %s2697_s28 = smov 128  }
  0x4e   : > { %2011 = dma.hbm_to_vmem [thread:$0]  (!%p2376_p13), %s2383_s22, 1152, %s2385_s27, %s2387_s24, %s2697_s28, %s2697_s28, %s2696_s25  }
  0x4f   : > { %p2698_p0 = scmp.ne.s32.totalorder %s2688_s17, 0 }
  0x50   : > { %s2421_s14 = sand.u32 (!%p2698_p0), 1, %s2198_s10   ;;  %p2699_p5 = scmp.ne.s32.totalorder (!%p2698_p0), %s2686_s15, 0 }
  0x51   : > { %321 = sbr.rel (%p2698_p0) target bundleno = 1441 (0x5a1), region = 56  ;;  %s324_s23 = scalar_lea.sflag (!%p2698_p0), [#allocation3], %s2421_s14 }
  0x52   : > { %s1995_s19 = smul.u32 (!%p2698_p0), 72, %s2421_s14 }
  0x54   : > { %s2425_s20 = scalar_lea.vmem (!%p2698_p0), [#allocation2], %s1995_s19 }
  0x58   : > { %2181 = dma.done.wait (%p2699_p5), %s324_s23, 1152  }
  0x59   : > { %2183 = vsyncadd (%p2699_p5), %s324_s23, 4294966144  ;;  %p2700_p13 = scmp.eq.s32.totalorder %s2297_s13, 0 }
  0x5b   : > { %2185 = dma.done.wait (%p2700_p13), [#allocation6], 2304   ;;  %p2701_p2 = pmov %p2700_p13 }
  0x5c   : > { %v2212_v0 = vmov 0.0|0.0   ;;  %vm2213_vm0 = vmmov 0   ;;  %v2214_v1 = vmov 0.0   ;;  %v2215_v2 = vmov 0   ;;  %v368_v3 = vld [vmem:[%s2425_s20] sm:$0xff]  ;;  %v369_v4 = vld [vmem:[%s2425_s20 + $0x8] sm:$0xff] }
  0x5d   : > { %2187 = vsyncadd (%p2701_p2), [#allocation6], 4294964992  ;;  %1913 = vmatprep.subr.bf16.mxu1 %v2212_v0  ;;  %1823 = vmatprep.mubr.msk.f32.mxu1 %vm2213_vm0, %v2214_v1  ;;  %v370_v5 = vld [vmem:[%s2425_s20 + $0x10] sm:$0xff]  ;;  %v1914_v6 = vpack.c.bf16 %v369_v4, %v368_v3  ;;  %v371_v7 = vld [vmem:[%s2425_s20 + $0x18] sm:$0xff]  ;;  %vm383_vm1 = vcmask 588800   ;;  %s2216_s22 = smov 8  }
  0x5e   : > { %2068 = vset.pattern.permute.xlu0 %v2215_v2  ;;  %2069 = vset.pattern.permute.xlu1 %v2215_v2  ;;  %v1917_v8 = vpack.c.bf16 %v371_v7, %v370_v5  ;;  %v377_v9 = vld [vmem:[%s2668_s4] sm:$0xff]  ;;  %v373_v11 = vld [vmem:[%s2425_s20 + $0x28] sm:$0xff]  ;;  %v374_v13 = vld [vmem:[%s2425_s20 + $0x30] sm:$0xff]  ;;  %s2217_s27 = smov 9   ;;  %s2218_s18 = smov 7   ;;  %vm737_vm2 = vcmask 130048  }
  0x5f   : > { %1915 = vmatpush3.bf16.msra.mxu1 %v1914_v6  ;;  %v372_v10 = vld [vmem:[%s2425_s20 + $0x20] sm:$0xff]  ;;  %380 = vperm.xlu0 %2068, %v377_v9   ;;  %v375_v14 = vld [vmem:[%s2425_s20 + $0x38] sm:$0xff]  ;;  %s2219_s26 = smov 1   ;;  %s2220_s28 = smov 127  }
  0x60   : > { %1916 = vmatprep.subr.bf16.mxu1 %v2212_v0  ;;  %v1920_v12 = vpack.c.bf16 %v373_v11, %v372_v10  ;;  %v1923_v15 = vpack.c.bf16 %v375_v14, %v374_v13  ;;  %v376_v16 = vld [vmem:[%s2425_s20 + $0x40] sm:$0xff]  ;;  %s2681_s19 = smov 121   ;;  %s2683_s23 = smov 120  }
  0x61   : > { %v367_v17 = vld [vmem:[%s2667_s3] sm:$0xff]  ;;  %s2223_s20 = smov 119   ;;  %v558_v23 = vld [vmem:[%s2670_s6 + $0x8] sm:$0xff]  ;;  %s2702_s21 = smov 121  }
  0x62   : > { %v553_v22 = vld [vmem:[%s2669_s5] sm:$0xff]  ;;  %v2520_v51 = vld [vmem:[%s2665_s1 + $0x8] ss:$0 sm:$0xff]  ;;  %s2703_s24 = smov 120   ;;  %s1595_s7 = scalar_lea.sflag [#allocation4], %s2421_s14 }
  0x63   : > { %1918 = vmatpush3.bf16.msra.mxu1 %v1917_v8  ;;  %v557_v24 = vld [vmem:[%s2670_s6] sm:$0xff]  ;;  %v554_v55 = vld [vmem:[%s2669_s5 + $0x8] sm:$0xff]  ;;  %s2224_s25 = smov [#allocation7]  }
  0x64   : > { %1919 = vmatprep.subr.bf16.mxu1 %v2212_v0  ;;  %v2472_v25 = vld [vmem:[%s2665_s1 + $0x1] ss:$0 sm:$0xff]  ;;  %v2477_v26 = vld [vmem:[%s2665_s1] ss:$0 sm:$0xff]  ;;  %v2484_v31 = vld [vmem:[%s2665_s1 + $0x2] ss:$0 sm:$0xff] }
  0x65   : > { %v2489_v32 = vld [vmem:[%s2665_s1 + $0x3] ss:$0 sm:$0xff]  ;;  %v2496_v38 = vld [vmem:[%s2665_s1 + $0x4] ss:$0 sm:$0xff]  ;;  %v2501_v39 = vld [vmem:[%s2665_s1 + $0x5] ss:$0 sm:$0xff] }
  0x66   : > { %v2508_v45 = vld [vmem:[%s2665_s1 + $0x6] ss:$0 sm:$0xff]  ;;  %v2513_v46 = vld [vmem:[%s2665_s1 + $0x7] ss:$0 sm:$0xff]  ;;  %v2530_v59 = vld [vmem:[%s2666_s2] ss:$0 sm:$0xff] }
  0x67   : > { %1921 = vmatpush3.bf16.msra.mxu1 %v1920_v12 }
  0x68   : > { %1922 = vmatprep.subr.bf16.mxu1 %v2212_v0 }
  0x6b   : > { %1924 = vmatpush3.bf16.msra.mxu1 %v1923_v15 }
  0x6c   : > { %1821 = vmatprep.subr.mxu1 %v2214_v1 }
  0x6f   : > { %1822 = vmatpush3.msra.mxu1 %v376_v16 }
  0x70   : > { %1824 = vmatmul.mubr.msk.f32.vlgmr.msra.gmra.mrb[0].mxu1 %vm383_vm1, %v367_v17 }
  0x71   : > { %1844 = vmatprep.mubr.msk.f32.mxu1 %vm383_vm1, %v553_v22  ;;  %v729_v22 = vld [vmem:[#allocation5 + $0x10] sm:$0xff] }
  0x72   : > { %1854 = vmatprep.mubr.msk.f32.mxu0 %vm737_vm2, %v729_v22  ;;  %v1265_v22 = vld [vmem:[#allocation5 + $0x60] sm:$0xff] }
  0xde   : > { %v381_v18 = vpop.permute.xlu0 %380 }
 0x143   : > { %v453_v19 = vpop.f32.mrb[0].mxu1 }
 0x144   : > { %v454_v20 = vadd.f32 %v453_v19, %v381_v18  ;;  %v1825_v21 = vpop.f32.mrb[1].mxu1 }
 0x146   : > { %467 = vrot.lane.b32.xlu1 %v454_v20, %s2216_s22  ;;  %457 = vrot.lane.b32.xlu0 %v454_v20, %s2217_s27  ;;  %v508_v43 = vmul.f32 %v2496_v38, %v454_v20 }
 0x14a   : > { %478 = vrot.lane.b32.xlu1 %v454_v20, %s2218_s18  ;;  %489 = vrot.lane.b32.xlu0 %v454_v20, %s2219_s26 }
 0x14e   : > { %509 = vrot.lane.b32.xlu1 %v454_v20, %s2220_s28  ;;  %520 = vrot.lane.b32.xlu0 %v454_v20, %s2681_s19 }
 0x152   : > { %531 = vrot.lane.b32.xlu1 %v454_v20, %s2683_s23  ;;  %542 = vrot.lane.b32.xlu0 %v454_v20, %s2223_s20 }
 0x156   : > { %568 = vperm.xlu0 %2068, %v558_v23   ;;  %563 = vperm.xlu1 %2069, %v557_v24  }
 0x1b8   : > { %v468_v27 = vpop.permute.xlu1 %467  ;;  %v458_v28 = vpop.permute.xlu0 %457 }
 0x1b9   : > { %v477_v29 = vmul.f32 %v2472_v25, %v468_v27  ;;  %v466_v30 = vmul.f32 %v2477_v26, %v458_v28 }
 0x1bb   : > { %v1925_v33 = vpack.c.bf16 %v477_v29, %v466_v30 }
 0x1bc   : > { %v479_v34 = vpop.permute.xlu1 %478  ;;  %v490_v35 = vpop.permute.xlu0 %489 }
 0x1bd   : > { %v488_v36 = vmul.f32 %v2484_v31, %v479_v34  ;;  %v499_v37 = vmul.f32 %v2489_v32, %v490_v35  ;;  %1926 = vmatprep.subr.bf16.mxu1 %v1925_v33 }
 0x1be   : > { %1928 = vmatpush3.bf16.msra.mxu1 %v1925_v33 }
 0x1bf   : > { %v1929_v40 = vpack.c.bf16 %v499_v37, %v488_v36  ;;  %v1541_v37 = vld [vmem:[%s2672_s8 + $0x8] sm:$0xff] }
 0x1c0   : > { %v510_v41 = vpop.permute.xlu1 %509  ;;  %v521_v42 = vpop.permute.xlu0 %520 }
 0x1c1   : > { %v519_v44 = vmul.f32 %v2501_v39, %v510_v41  ;;  %1930 = vmatprep.subr.bf16.mxu1 %v1929_v40  ;;  %v530_v49 = vmul.f32 %v2508_v45, %v521_v42  ;;  %v556_v41 = vld [vmem:[%s2669_s5 + $0x18] sm:$0xff] }
 0x1c2   : > { %1932 = vmatpush3.bf16.msra.mxu1 %v1929_v40  ;;  %v555_v40 = vld [vmem:[%s2669_s5 + $0x10] sm:$0xff] }
 0x1c3   : > { %v1933_v47 = vpack.c.bf16 %v519_v44, %v508_v43 }
 0x1c4   : > { %v532_v48 = vpop.permute.xlu1 %531  ;;  %v543_v52 = vpop.permute.xlu0 %542 }
 0x1c5   : > { %v541_v50 = vmul.f32 %v2513_v46, %v532_v48  ;;  %1934 = vmatprep.subr.bf16.mxu1 %v1933_v47  ;;  %v552_v54 = vmul.f32 %v2520_v51, %v543_v52 }
 0x1c6   : > { %1936 = vmatpush3.bf16.msra.mxu1 %v1933_v47 }
 0x1c7   : > { %v1937_v53 = vpack.c.bf16 %v541_v50, %v530_v49 }
 0x1c9   : > { %1938 = vmatprep.subr.bf16.mxu1 %v1937_v53 }
 0x1ca   : > { %1940 = vmatpush3.bf16.msra.mxu1 %v1937_v53 }
 0x1cb   : > { %1842 = vmatprep.subr.mxu1 %v552_v54 }
 0x1ce   : > { %1843 = vmatpush3.msra.mxu1 %v552_v54  ;;  %v730_v54 = vld [vmem:[#allocation5 + $0x18] sm:$0xff] }
 0x1cf   : > { %1845 = vmatmul.mubr.msk.f32.vlgmr.msra.gmra.mrb[2].mxu1 %vm383_vm1, %v554_v55 }
 0x1d0   : > { %1847 = vmatprep.mubr.msk.f32.mxu1 %vm383_vm1, %v555_v40 }
 0x1d3   : > { %1848 = vmatmul.mubr.msk.f32.gmra.mrb[4].mxu1 %vm383_vm1, %v556_v41 }
 0x1d5   : > { %v564_v56 = vpop.permute.xlu1 %563  ;;  %v569_v57 = vpop.permute.xlu0 %568 }
 0x2a2   : > { %v1846_v58 = vpop.f32.mrb[2].mxu1 }
 0x2a3   : > { %v665_v60 = vadd.f32 %v1846_v58, %v569_v57  ;;  %v659_v61 = vpop.f32.mrb[3].mxu1  ;;  %v720_v57 = vld [vmem:[#allocation5] sm:$0xff] }
 0x2a4   : > { %v660_v62 = vadd.f32 %v659_v61, %v564_v56 }
 0x2a5   : > { %v685_v63 = vmul.f32 %v2530_v59, %v665_v60 }
 0x2a6   : > { %v684_v0 = vmul.f32 %v2530_v59, %v660_v62 }
 0x2a7   : > { %688 = vadd.xlane.f32.xlu0 %v685_v63  ;;  %v693_v2 = vmul.f32 %v685_v63, %v685_v63 }
 0x2a8   : > { %686 = vadd.xlane.f32.xlu1 %v684_v0  ;;  %v692_v1 = vmul.f32 %v684_v0, %v684_v0 }
 0x2ab   : > { %694 = vadd.xlane.f32.xlu0 %v692_v1  ;;  %v721_v1 = vld [vmem:[#allocation5 + $0x8] sm:$0xff] }
 0x2ac   : > { %696 = vadd.xlane.f32.xlu1 %v693_v2 }
 0x334   : > { %v689_v3 = vpop.xlane.xlu0 %688 }
 0x335   : > { %v687_v4 = vpop.xlane.xlu1 %686  ;;  %v691_v5 = vmul.f32 0.015625, %v689_v3  ;;  %v901_v3 = vld [vmem:[#allocation5 + $0x20] sm:$0xff] }
 0x336   : > { %v690_v6 = vmul.f32 0.015625, %v687_v4  ;;  %v993_v4 = vld [vmem:[#allocation5 + $0x30] sm:$0xff] }
 0x337   : > { %v701_v11 = vmul.f32 %v691_v5, %v691_v5  ;;  %v707_v21 = vsub.f32 %v665_v60, %v691_v5 }
 0x338   : > { %v700_v7 = vmul.f32 %v690_v6, %v690_v6  ;;  %v695_v8 = vpop.xlane.xlu0 %694  ;;  %v706_v19 = vsub.f32 %v660_v62, %v690_v6 }
 0x339   : > { %v698_v9 = vmul.f32 0.015625, %v695_v8  ;;  %v697_v10 = vpop.xlane.xlu1 %696  ;;  %v994_v8 = vld [vmem:[#allocation5 + $0x38] sm:$0xff] }
 0x33a   : > { %v699_v12 = vmul.f32 0.015625, %v697_v10 }
 0x33b   : > { %v702_v13 = vsub.f32 %v698_v9, %v700_v7  ;;  %v1085_v9 = vld [vmem:[#allocation5 + $0x40] sm:$0xff] }
 0x33c   : > { %v703_v14 = vsub.f32 %v699_v12, %v701_v11 }
 0x33d   : > { %v704_v15 = vmax.f32 %v702_v13, 0.0 }
 0x33e   : > { %v705_v16 = vmax.f32 %v703_v14, 0.0 }
 0x33f   : > { %v708_v17 = vadd.f32 1e-05, %v704_v15  ;;  %v1086_v15 = vld [vmem:[#allocation5 + $0x48] sm:$0xff] }
 0x340   : > { %v709_v18 = vadd.f32 1e-05, %v705_v16  ;;  %v1173_v16 = vld [vmem:[#allocation5 + $0x50] sm:$0xff] }
 0x341   : > { %2070 = vrsqrt.f32 %v708_v17 }
 0x342   : > { %2072 = vrsqrt.f32 %v709_v18 }
 0x34b   : > { %v2071_v20 = vpop.eup %2070 }
 0x34c   : > { %v2073_v23 = vpop.eup %2072  ;;  %v712_v24 = vmul.f32 %v2071_v20, %v706_v19 }
 0x34d   : > { %v713_v27 = vmul.f32 %v2073_v23, %v707_v21  ;;  %v1174_v21 = vld [vmem:[#allocation5 + $0x58] sm:$0xff] }
 0x34e   : > { %vm714_vm3 = vcmp.ge.f32.partialorder %v712_v24, 0.0  ;;  %v716_v28 = vmul.f32 0.2, %v712_v24 }
 0x34f   : > { %vm715_vm4 = vcmp.ge.f32.partialorder %v713_v27, 0.0  ;;  %v717_v29 = vmul.f32 0.2, %v713_v27 }
 0x350   : > { %v718_v30 = vsel %vm714_vm3, %v712_v24, %v716_v28 }
 0x351   : > { %v719_v33 = vsel %vm715_vm4, %v713_v27, %v717_v29  ;;  %731 = vrot.lane.b32.xlu0 %v718_v30, %s2216_s22  ;;  %v1087_v34 = vmul.f32 %v2496_v38, %v718_v30  ;;  %v1266_v29 = vld [vmem:[#allocation5 + $0x68] sm:$0xff] }
 0x352   : > { %733 = vrot.lane.b32.xlu1 %v719_v33, %s2216_s22  ;;  %v1088_v35 = vmul.f32 %v2496_v38, %v719_v33  ;;  %v1540_v38 = vld [vmem:[%s2672_s8] sm:$0xff] }
 0x354   : > { %v2539_v36 = vpack.c.bf16 %v1088_v35, %v1087_v34  ;;  %v1449_v34 = vld [vmem:[#allocation5 + $0x80] sm:$0xff]  ;;  %v1450_v35 = vld [vmem:[#allocation5 + $0x88] sm:$0xff] }
 0x355   : > { %724 = vrot.lane.b32.xlu0 %v719_v33, %s2217_s27 }
 0x356   : > { %722 = vrot.lane.b32.xlu1 %v718_v30, %s2217_s27 }
 0x359   : > { %905 = vrot.lane.b32.xlu0 %v719_v33, %s2218_s18 }
 0x35a   : > { %903 = vrot.lane.b32.xlu1 %v718_v30, %s2218_s18 }
 0x35d   : > { %997 = vrot.lane.b32.xlu0 %v719_v33, %s2219_s26 }
 0x35e   : > { %995 = vrot.lane.b32.xlu1 %v718_v30, %s2219_s26  ;;  %s1745_s26 = sshll.u32 %s2297_s13, 8 }
 0x35f   : > { %s2619_s23 = scalar_lea.hbm %s2673_s9, %s1745_s26 }
 0x361   : > { %1177 = vrot.lane.b32.xlu0 %v719_v33, %s2220_s28 }
 0x362   : > { %1175 = vrot.lane.b32.xlu1 %v718_v30, %s2220_s28 }
 0x365   : > { %1269 = vrot.lane.b32.xlu0 %v719_v33, %s2702_s21 }
 0x366   : > { %1267 = vrot.lane.b32.xlu1 %v718_v30, %s2702_s21 }
 0x369   : > { %1361 = vrot.lane.b32.xlu0 %v719_v33, %s2703_s24 }
 0x36a   : > { %1359 = vrot.lane.b32.xlu1 %v718_v30, %s2703_s24  ;;  %s1698_s24 = sshll.u32 %s2421_s14, 4 }
 0x36b   : > { %s365_s27 = scalar_lea.vmem [#allocation7], %s1698_s24 }
 0x36c   : > { %s1608_s18 = sshll.u32 %s365_s27, 4  ;;  %s2614_s18 = int_to_ptr.vmem [resolvable:$true] %s1608_s18 }
 0x36d   : > { %1453 = vrot.lane.b32.xlu0 %v719_v33, %s2223_s20  ;;  %s2136_s13 = scalar_lea.vmem %s2614_s18, 256 }
 0x36e   : > { %1451 = vrot.lane.b32.xlu1 %v718_v30, %s2223_s20  ;;  %v1357_v30 = vld [vmem:[#allocation5 + $0x70] sm:$0xff]  ;;  %p2137_p4 = scmp.ne.s32.totalorder %s2614_s18, %s2136_s13  ;;  %s2140_s20 = sshll.u32 %s2224_s25, 4  ;;  %s2141_s20 = int_to_ptr.vmem [resolvable:$false] %s2140_s20 }
 0x36f   : > { %s2142_s15 = scalar_lea.vmem %s2141_s20, 512  ;;  %p2143_p10 = scmp.lt.s32.totalorder %s2614_s18, %s2141_s20 }
 0x370   : > { %p2138_p6 = pnand %p2137_p4, %p2370_p12  ;;  %p2144_p11 = scmp.lt.s32.totalorder %s2142_s15, %s2136_s13 }
 0x371   : > { %1549 = vperm.xlu0 %2068, %v1541_v37  }
 0x372   : > { %1544 = vperm.xlu1 %2069, %v1540_v38   ;;  %p2139_p8 = pneg %p2138_p6  ;;  %p2145_p3 = por %p2144_p11, %p2143_p10 }
 0x374   : > { %p2146_p7 = pnand %p2145_p3, %p2139_p8 }
 0x3c3   : > { %v732_v42 = vpop.permute.xlu0 %731 }
 0x3c4   : > { %v735_v43 = vmul.f32 %v2472_v25, %v732_v42  ;;  %v734_v44 = vpop.permute.xlu1 %733 }
 0x3c5   : > { %v736_v47 = vmul.f32 %v2472_v25, %v734_v44 }
 0x3c7   : > { %v725_v48 = vpop.permute.xlu0 %724  ;;  %v1941_v49 = vpack.c.bf16 %v736_v47, %v735_v43 }
 0x3c8   : > { %v727_v50 = vmul.f32 %v2477_v26, %v725_v48  ;;  %v723_v52 = vpop.permute.xlu1 %722  ;;  %v560_v48 = vld [vmem:[%s2670_s6 + $0x18] sm:$0xff] }
 0x3c9   : > { %v726_v53 = vmul.f32 %v2477_v26, %v723_v52  ;;  %1942 = vmatprep.subr.bf16.mxu0 %v1941_v49 }
 0x3ca   : > { %1944 = vmatpush3.bf16.msra.mxu0 %v1941_v49  ;;  %v559_v49 = vld [vmem:[%s2670_s6 + $0x10] sm:$0xff] }
 0x3cb   : > { %v1945_v55 = vpack.c.bf16 %v727_v50, %v726_v53  ;;  %v906_v56 = vpop.permute.xlu0 %905  ;;  %v1849_v50 = vpop.f32.mrb[4].mxu1 }
 0x3cc   : > { %v908_v58 = vmul.f32 %v2484_v31, %v906_v56  ;;  %v904_v60 = vpop.permute.xlu1 %903  ;;  %v669_v52 = vpop.f32.mrb[5].mxu1 }
 0x3cd   : > { %v907_v61 = vmul.f32 %v2484_v31, %v904_v60  ;;  %1855 = vmatmul.mubr.msk.f32.vlgmr.msra.gmra.mrb[0].mxu0 %vm737_vm2, %v730_v54  ;;  %1946 = vmatprep.subr.bf16.mxu0 %v1945_v55  ;;  %v902_v31 = vld [vmem:[#allocation5 + $0x28] sm:$0xff] }
 0x3ce   : > { %1948 = vmatpush3.bf16.msra.mxu0 %v1945_v55  ;;  %1861 = vmatprep.mubr.msk.f32.mxu0 %vm737_vm2, %v720_v57 }
 0x3cf   : > { %v1949_v25 = vpack.c.bf16 %v908_v58, %v907_v61  ;;  %v998_v62 = vpop.permute.xlu0 %997 }
 0x3d0   : > { %v1000_v26 = vmul.f32 %v2489_v32, %v998_v62  ;;  %v996_v63 = vpop.permute.xlu1 %995 }
 0x3d1   : > { %v999_v0 = vmul.f32 %v2489_v32, %v996_v63  ;;  %1950 = vmatprep.subr.bf16.mxu0 %v1949_v25 }
 0x3d3   : > { %v1953_v2 = vpack.c.bf16 %v1000_v26, %v999_v0  ;;  %v1178_v5 = vpop.permute.xlu0 %1177 }
 0x3d4   : > { %v1176_v6 = vpop.permute.xlu1 %1175  ;;  %v1180_v32 = vmul.f32 %v2501_v39, %v1178_v5 }
 0x3d5   : > { %1862 = vmatmul.mubr.msk.f32.vlgmr.msra.gmra.mrb[0].mxu0 %vm737_vm2, %v721_v1  ;;  %v1179_v7 = vmul.f32 %v2501_v39, %v1176_v6 }
 0x3d6   : > { %1952 = vmatpush3.bf16.msra.mxu0 %v1949_v25  ;;  %1868 = vmatprep.mubr.msk.f32.mxu0 %vm737_vm2, %v901_v3 }
 0x3d7   : > { %1954 = vmatprep.subr.bf16.mxu0 %v1953_v2  ;;  %v1961_v10 = vpack.c.bf16 %v1180_v32, %v1179_v7  ;;  %v1270_v11 = vpop.permute.xlu0 %1269 }
 0x3d8   : > { %v1268_v12 = vpop.permute.xlu1 %1267  ;;  %v1272_v13 = vmul.f32 %v2508_v45, %v1270_v11 }
 0x3d9   : > { %v1271_v14 = vmul.f32 %v2508_v45, %v1268_v12 }
 0x3db   : > { %v1965_v17 = vpack.c.bf16 %v1272_v13, %v1271_v14  ;;  %v1362_v39 = vpop.permute.xlu0 %1361 }
 0x3dc   : > { %v1360_v18 = vpop.permute.xlu1 %1359  ;;  %v1364_v19 = vmul.f32 %v2513_v46, %v1362_v39 }
 0x3dd   : > { %1869 = vmatmul.mubr.msk.f32.vlgmr.msra.gmra.mrb[0].mxu0 %vm737_vm2, %v902_v31  ;;  %v1363_v20 = vmul.f32 %v2513_v46, %v1360_v18  ;;  %v1358_v46 = vld [vmem:[#allocation5 + $0x78] sm:$0xff] }
 0x3de   : > { %1956 = vmatpush3.bf16.msra.mxu0 %v1953_v2  ;;  %1875 = vmatprep.mubr.msk.f32.mxu0 %vm737_vm2, %v993_v4 }
 0x3df   : > { %1958 = vmatprep.subr.bf16.mxu0 %v2539_v36  ;;  %v1969_v23 = vpack.c.bf16 %v1364_v19, %v1363_v20  ;;  %v1454_v45 = vpop.permute.xlu0 %1453 }
 0x3e0   : > { %v1452_v24 = vpop.permute.xlu1 %1451  ;;  %v1456_v27 = vmul.f32 %v2520_v51, %v1454_v45 }
 0x3e1   : > { %v1455_v28 = vmul.f32 %v2520_v51, %v1452_v24 }
 0x3e3   : > { %v1973_v33 = vpack.c.bf16 %v1456_v27, %v1455_v28 }
 0x3e5   : > { %1876 = vmatmul.mubr.msk.f32.vlgmr.msra.gmra.mrb[0].mxu0 %vm737_vm2, %v994_v8 }
 0x3e6   : > { %1960 = vmatpush3.bf16.msra.mxu0 %v2539_v36  ;;  %1882 = vmatprep.mubr.msk.f32.mxu0 %vm737_vm2, %v1085_v9 }
 0x3e7   : > { %1962 = vmatprep.subr.bf16.mxu0 %v1961_v10 }
 0x3ed   : > { %1883 = vmatmul.mubr.msk.f32.vlgmr.msra.gmra.mrb[0].mxu0 %vm737_vm2, %v1086_v15 }
 0x3ee   : > { %1964 = vmatpush3.bf16.msra.mxu0 %v1961_v10  ;;  %1889 = vmatprep.mubr.msk.f32.mxu0 %vm737_vm2, %v1173_v16 }
 0x3ef   : > { %1966 = vmatprep.subr.bf16.mxu0 %v1965_v17 }
 0x3f0   : > { %v1550_v51 = vpop.permute.xlu0 %1549 }
 0x3f1   : > { %v1545_v37 = vpop.permute.xlu1 %1544 }
 0x3f5   : > { %1890 = vmatmul.mubr.msk.f32.vlgmr.msra.gmra.mrb[0].mxu0 %vm737_vm2, %v1174_v21 }
 0x3f6   : > { %1968 = vmatpush3.bf16.msra.mxu0 %v1965_v17  ;;  %1896 = vmatprep.mubr.msk.f32.mxu0 %vm737_vm2, %v1265_v22 }
 0x3f7   : > { %1970 = vmatprep.subr.bf16.mxu0 %v1969_v23 }
 0x3fd   : > { %1897 = vmatmul.mubr.msk.f32.vlgmr.msra.gmra.mrb[0].mxu0 %vm737_vm2, %v1266_v29 }
 0x3fe   : > { %1972 = vmatpush3.bf16.msra.mxu0 %v1969_v23  ;;  %1903 = vmatprep.mubr.msk.f32.mxu0 %vm737_vm2, %v1357_v30 }
 0x3ff   : > { %1974 = vmatprep.subr.bf16.mxu0 %v1973_v33 }
 0x405   : > { %1904 = vmatmul.mubr.msk.f32.vlgmr.msra.gmra.mrb[0].mxu0 %vm737_vm2, %v1358_v46 }
 0x406   : > { %1976 = vmatpush3.bf16.msra.mxu0 %v1973_v33  ;;  %1910 = vmatprep.mubr.msk.f32.mxu0 %vm737_vm2, %v1449_v34 }
 0x40d   : > { %1911 = vmatmul.mubr.msk.f32.vlgmr.msra.gmra.mrb[0].mxu0 %vm737_vm2, %v1450_v35 }
 0x4e0   : > { %v1912_v36 = vpop.f32.mrb[0].mxu0 }
 0x4e1   : > { %v1553_v38 = vadd.f32 %v1912_v36, %v1550_v51  ;;  %v1529_v40 = vpop.f32.mrb[1].mxu0 }
 0x4e2   : > { %v1552_v41 = vadd.f32 %v1545_v37, %v1529_v40 }
 0x4e3   : > { %v1555_v42 = vmul.f32 %v2530_v59, %v1553_v38 }
 0x4e4   : > { %v1554_v43 = vmul.f32 %v2530_v59, %v1552_v41 }
 0x4e5   : > { %1558 = vadd.xlane.f32.xlu0 %v1555_v42  ;;  %v1563_v47 = vmul.f32 %v1555_v42, %v1555_v42 }
 0x4e6   : > { %1556 = vadd.xlane.f32.xlu1 %v1554_v43  ;;  %v1562_v44 = vmul.f32 %v1554_v43, %v1554_v43 }
 0x4e9   : > { %1564 = vadd.xlane.f32.xlu0 %v1562_v44 }
 0x4ea   : > { %1566 = vadd.xlane.f32.xlu1 %v1563_v47 }
 0x4fb   : > { %578 = vperm.xlu1 %2069, %v560_v48  }
 0x4ff   : > { %573 = vperm.xlu0 %2068, %v559_v49  }
 0x572   : > { %v1559_v53 = vpop.xlane.xlu0 %1558 }
 0x573   : > { %v1557_v59 = vpop.xlane.xlu1 %1556  ;;  %v1561_v54 = vmul.f32 0.015625, %v1559_v53 }
 0x574   : > { %v1560_v55 = vmul.f32 0.015625, %v1557_v59 }
 0x575   : > { %v1571_v61 = vmul.f32 %v1561_v54, %v1561_v54  ;;  %v1577_v6 = vsub.f32 %v1553_v38, %v1561_v54 }
 0x576   : > { %v1570_v56 = vmul.f32 %v1560_v55, %v1560_v55  ;;  %v1565_v57 = vpop.xlane.xlu0 %1564  ;;  %v1576_v31 = vsub.f32 %v1552_v41, %v1560_v55 }
 0x577   : > { %v1568_v58 = vmul.f32 0.015625, %v1565_v57  ;;  %v1567_v60 = vpop.xlane.xlu1 %1566 }
 0x578   : > { %v1569_v25 = vmul.f32 0.015625, %v1567_v60 }
 0x579   : > { %v1572_v62 = vsub.f32 %v1568_v58, %v1570_v56 }
 0x57a   : > { %v1573_v26 = vsub.f32 %v1569_v25, %v1571_v61 }
 0x57b   : > { %v1574_v63 = vmax.f32 %v1572_v62, 0.0  ;;  %v579_v4 = vpop.permute.xlu1 %578 }
 0x57c   : > { %v1575_v0 = vmax.f32 %v1573_v26, 0.0  ;;  %v675_v10 = vadd.f32 %v1849_v50, %v579_v4 }
 0x57d   : > { %v1578_v1 = vadd.f32 1e-05, %v1574_v63 }
 0x57e   : > { %v1579_v2 = vadd.f32 1e-05, %v1575_v0  ;;  %v574_v3 = vpop.permute.xlu0 %573 }
 0x57f   : > { %2074 = vrsqrt.f32 %v1578_v1  ;;  %v670_v8 = vadd.f32 %v669_v52, %v574_v3 }
 0x580   : > { %2076 = vrsqrt.f32 %v1579_v2 }
 0x589   : > { %v2075_v5 = vpop.eup %2074 }
 0x58a   : > { %v2077_v32 = vpop.eup %2076  ;;  %v1582_v7 = vmul.f32 %v2075_v5, %v1576_v31 }
 0x58b   : > { %v1583_v9 = vmul.f32 %v2077_v32, %v1577_v6 }
 0x58c   : > { %v1584_v11 = vadd.f32 %v1582_v7, %v670_v8 }
 0x58d   : > { %v1585_v12 = vadd.f32 %v1583_v9, %v675_v10 }
 0x58e   : > { %vm1586_vm5 = vcmp.ge.f32.partialorder %v1584_v11, 0.0  ;;  %v1588_v13 = vmul.f32 0.2, %v1584_v11 }
 0x58f   : > { %vm1587_vm6 = vcmp.ge.f32.partialorder %v1585_v12, 0.0  ;;  %v1589_v14 = vmul.f32 0.2, %v1585_v12 }
 0x590   : > { %v1590_v15 = vsel %vm1586_vm5, %v1584_v11, %v1588_v13 }
 0x591   : > { %v1591_v16 = vsel %vm1587_vm6, %v1585_v12, %v1589_v14  ;;  %1592 = vst [vmem:[%s365_s27] sm:$0xff] %v1590_v15 }
 0x592   : > { %1593 = vst [vmem:[%s365_s27 + $0x8] sm:$0xff] %v1591_v16 }
 0x593   : > { %2149 = shalt.err (!%p2146_p7)
}
 0x594   : > { %s2150_s17 = scalar_lea.hbm %s2619_s23, 256  ;;  %s2154_s27 = scalar_lea.hbm %s2673_s9, 512 }
 0x595   : > { %p2151_p9 = scmp.ne.s32.totalorder %s2619_s23, %s2150_s17  ;;  %p2155_p5 = scmp.lt.u32.totalorder %s2619_s23, %s2673_s9 }
 0x596   : > { %p2156_p13 = scmp.lt.u32.totalorder %s2154_s27, %s2150_s17  ;;  %p2158_p4 = scmp.lt.u32.totalorder %s2150_s17, %s2619_s23 }
 0x597   : > { %p2152_p1 = pnand %p2151_p9, %p2370_p12 }
 0x598   : > { %p2157_p2 = por %p2156_p13, %p2155_p5 }
 0x599   : > { %p2153_p0 = pneg %p2152_p1 }
 0x59a   : > { %p2159_p6 = por %p2158_p4, %p2157_p2 }
 0x59c   : > { %p2160_p8 = pnand %p2159_p6, %p2153_p0 }
 0x59e   : > { %2163 = shalt.err (!%p2160_p8)
}
 0x59f   : > { %s2225_s28 = smov 128  }
 0x5a0   : > { %2002 = dma.vmem_to_hbm [thread:$0]  (%p2370_p12), %s2614_s18, 256, %s2619_s23, %s1595_s7, %s2225_s28, %s2225_s28, %s2216_s22  }
 0x5a1 PF: > { %s1623_s13 = sand.u32 1, %s2194_s30   ;;  %p2704_p10 = scmp.ne.s32.totalorder %s2687_s16, 0 }
 0x5a2   : > { %p2705_p11 = scmp.ge.s32.totalorder %s2206_s12, 2  ;;  %s1624_s25 = scalar_lea.sflag [#allocation4], %s1623_s13 }
 0x5a4   : > { %p2013_p3 = pnand %p2705_p11, %p2704_p10 }
 0x5a6   : > { %2189 = dma.done.wait (!%p2013_p3), %s1624_s25, 256  }
 0x5a7   : > { %2191 = vsyncadd (!%p2013_p3), %s1624_s25, 4294967040  ;;  %s2706_s12 = sld [smem:[#allocation11_spill]]  ;;  %s2707_s29 = sld [smem:[#allocation12_spill]] }
 0x5a8   : > { %s2708_s30 = smov %s2198_s10  ;;  %s2709_s10 = smov %s2202_s11 }
 0x5ad   : > { %p23_p7 = scmp.ge.s32.totalorder %s2706_s12, 4   ;;  %s2710_s11 = smov %s2707_s29 }
 0x5af   :  { %25 = sbr.rel (!%p23_p7) target bundleno = 8 (0x8), region = 121 }
 0x5b6   :  { %1629 = vsyncpa [#allocation3], 1 }
 0x5b7   :  { %1631 = vsyncpa [#allocation3 + $0x1], 1 }
 0x5b8   :  { %1632 = vsyncpa [#allocation6], 1 }
 0x5b9   :  { %1633 = vsyncpa [#allocation4], 1 }
 0x5ba   :  { %1635 = vsyncpa [#allocation4 + $0x1], 1 }

</bundles_post_ra>
